<compile_context>
chip_gen: v7x
topology: tpu7x:2x2x1
jax: 0.10.0
libtpu: 0.0.40
codegen_flags: <defaults>
</compile_context>

<pallas_src>
import jax
import jax.numpy as jnp
from jax.experimental import pallas as pl
from jax.experimental.pallas import tpu as pltpu


def predictor_kernel(x_ref, w1_ref, b1_ref, w2_ref, b2_ref, o_ref):
    # x_ref:  (B, S, H) f32   full last_hidden_state (VMEM)
    # w1_ref: (H, D1)   bf16  cached first-linear weight (VMEM)
    # b1_ref: (1, D1)   f32   (VMEM)
    # w2_ref: (1, D1)   f32   second-linear weight as a row (VMEM)
    # b2_ref: (1,)      f32   scalar in SMEM
    # o_ref:  (B, 1)    f32   (VMEM)
    x_cls = x_ref[:, 0, :].astype(jnp.bfloat16)              # CLS slice + cast in-kernel
    h1 = jnp.dot(x_cls, w1_ref[...], preferred_element_type=jnp.float32)
    h1 = jnp.maximum(h1 + b1_ref[...], 0.0)                  # (B, D1) ReLU, f32 VPU
    # Second Linear (D1 -> 1) as VPU multiply + lane reduction (avoids an
    # N=1 MXU push/pop on the critical path).
    out = jnp.sum(h1 * w2_ref[...], axis=-1, keepdims=True) + b2_ref[0]
    o_ref[...] = out.astype(o_ref.dtype)                     # (B, 1)


def make_predictor_head(w1, b1, w2, b2):
    """One-time init: cache kernel-friendly weight layouts, return per-call fn."""
    # All of this runs once, outside the per-call path.
    w1_bf16 = jnp.asarray(w1, jnp.bfloat16)                   # (H, D1) bf16, cached
    b1_row = jnp.asarray(b1, jnp.float32).reshape(1, -1)      # (1, D1)
    w2_row = jnp.asarray(w2, jnp.float32).T                   # (1, D1) row layout
    b2_flat = jnp.asarray(b2, jnp.float32).reshape((1,))      # (1,) for SMEM

    @jax.jit
    def head(last_hidden_state):
        B, S, H = last_hidden_state.shape
        return pl.pallas_call(
            predictor_kernel,
            out_shape=jax.ShapeDtypeStruct((B, 1), jnp.float32),
            in_specs=[
                pl.BlockSpec(memory_space=pltpu.MemorySpace.VMEM),  # last_hidden_state
                pl.BlockSpec(memory_space=pltpu.MemorySpace.VMEM),  # w1 (bf16, cached)
                pl.BlockSpec(memory_space=pltpu.MemorySpace.VMEM),  # b1 row
                pl.BlockSpec(memory_space=pltpu.MemorySpace.VMEM),  # w2 row
                pl.BlockSpec(memory_space=pltpu.MemorySpace.SMEM),  # b2 scalar
            ],
            out_specs=pl.BlockSpec(memory_space=pltpu.MemorySpace.VMEM),
        )(last_hidden_state, w1_bf16, b1_row, w2_row, b2_flat)

    return head


def reference_bf16(last_hidden_state, w1, b1, w2, b2):
    # Mirrors the kernel's numerics (bf16 first-matmul inputs, f32 accumulation).
    x = last_hidden_state[:, 0, :].astype(jnp.bfloat16)
    h = jnp.dot(x, w1.astype(jnp.bfloat16), preferred_element_type=jnp.float32)
    h = jnp.maximum(h + b1, 0.0)
    return h @ w2 + b2


def reference_f32(last_hidden_state, w1, b1, w2, b2):
    x = last_hidden_state[:, 0, :]
    h = jnp.maximum(x @ w1 + b1, 0.0)
    return h @ w2 + b2


if __name__ == "__main__":
    key = jax.random.PRNGKey(0)
    kx, k1, k2, k3, k4 = jax.random.split(key, 5)

    B, S, H, D1 = 2, 8, 768, 256

    # Synthetic deterministic "RoBERTa" output (stand-in for self.bert(**src)).
    last_hidden_state = jax.random.normal(kx, (B, S, H), dtype=jnp.float32)

    # Deterministic predictor parameters (nn.Linear(768,256), nn.Linear(256,1)).
    w1 = jax.random.normal(k1, (H, D1), dtype=jnp.float32) * (1.0 / jnp.sqrt(H))
    b1 = jax.random.normal(k2, (1, D1), dtype=jnp.float32) * 0.01
    w2 = jax.random.normal(k3, (D1, 1), dtype=jnp.float32) * (1.0 / jnp.sqrt(D1))
    b2 = jax.random.normal(k4, (1, 1), dtype=jnp.float32) * 0.01

    head = make_predictor_head(w1, b1, w2, b2)       # one-time weight caching
    out = jax.block_until_ready(head(last_hidden_state))
    assert out.shape == (B, 1), out.shape

    # Exact-semantics check (bf16 first matmul, f32 accumulation).
    ref_bf = reference_bf16(last_hidden_state, w1, b1, w2, b2)
    assert jnp.allclose(out, ref_bf, atol=1e-3, rtol=1e-3), (out, ref_bf)

    # Loose check against the full-f32 module semantics (bf16 cast only affects
    # the first matmul's inputs; the MLP head tolerates it easily).
    ref_f32 = reference_f32(last_hidden_state, w1, b1, w2, b2)
    assert jnp.allclose(out, ref_f32, atol=5e-2, rtol=5e-2), (out, ref_f32)

    print("KERNEL_OK")
</pallas_src>

<mosaic_0001>
module attributes {stable_mosaic.version = 11 : i64} {
  func.func @predictor_kernel(%arg0: memref<2x8x768xf32, #tpu.memory_space<vmem>>, %arg1: memref<768x256xbf16, #tpu.memory_space<vmem>>, %arg2: memref<1x256xf32, #tpu.memory_space<vmem>>, %arg3: memref<1x256xf32, #tpu.memory_space<vmem>>, %arg4: memref<1xf32, #tpu.memory_space<smem>>, %arg5: memref<2x1xf32, #tpu.memory_space<vmem>>) attributes {dimension_semantics = [], scalar_prefetch = 0 : i64, scratch_operands = 0 : i64, tpu.core_type = #tpu.core_type<tc>} {
    %c0 = arith.constant 0 : index
    %c0_0 = arith.constant 0 : index
    %c0_1 = arith.constant 0 : index
    %0 = vector.load %arg0[%c0, %c0_0, %c0_1] : memref<2x8x768xf32, #tpu.memory_space<vmem>>, vector<2x1x768xf32>
    %1 = vector.shape_cast %0 : vector<2x1x768xf32> to vector<2x768xf32>
    %2 = arith.truncf %1 : vector<2x768xf32> to vector<2x768xbf16>
    %c0_2 = arith.constant 0 : index
    %c0_3 = arith.constant 0 : index
    %3 = vector.load %arg1[%c0_2, %c0_3] : memref<768x256xbf16, #tpu.memory_space<vmem>>, vector<768x256xbf16>
    %cst = arith.constant dense<0.000000e+00> : vector<2x256xf32>
    %4 = tpu.matmul %2, %3, %cst {dimension_numbers = #tpu.dot_dimension_numbers<[1], [0], [0], [1], [0, 0, 1, 1], [], []>} : vector<2x768xbf16>, vector<768x256xbf16>, vector<2x256xf32> -> vector<2x256xf32>
    %c0_4 = arith.constant 0 : index
    %c0_5 = arith.constant 0 : index
    %5 = vector.load %arg2[%c0_4, %c0_5] : memref<1x256xf32, #tpu.memory_space<vmem>>, vector<1x256xf32>
    %6 = vector.broadcast %5 : vector<1x256xf32> to vector<2x256xf32>
    %7 = arith.addf %4, %6 : vector<2x256xf32>
    %cst_6 = arith.constant 0.000000e+00 : f32
    %8 = vector.broadcast %cst_6 : f32 to vector<2x256xf32>
    %9 = arith.maximumf %7, %8 : vector<2x256xf32>
    %c0_7 = arith.constant 0 : index
    %c0_8 = arith.constant 0 : index
    %10 = vector.load %arg3[%c0_7, %c0_8] : memref<1x256xf32, #tpu.memory_space<vmem>>, vector<1x256xf32>
    %11 = vector.broadcast %10 : vector<1x256xf32> to vector<2x256xf32>
    %12 = arith.mulf %9, %11 : vector<2x256xf32>
    %cst_9 = arith.constant dense<0.000000e+00> : vector<2xf32>
    %13 = vector.multi_reduction <add>, %12, %cst_9 [1] : vector<2x256xf32> to vector<2xf32>
    %14 = vector.shape_cast %13 : vector<2xf32> to vector<2x1xf32>
    %c0_10 = arith.constant 0 : index
    %15 = memref.load %arg4[%c0_10] : memref<1xf32, #tpu.memory_space<smem>>
    %16 = vector.broadcast %15 : f32 to vector<2x1xf32>
    %17 = arith.addf %14, %16 : vector<2x1xf32>
    %c0_11 = arith.constant 0 : index
    %c0_12 = arith.constant 0 : index
    %18 = vector.load %arg5[%c0_11, %c0_12] : memref<2x1xf32, #tpu.memory_space<vmem>>, vector<2x1xf32>
    tpu.vector_store %arg5[%c0_11, %c0_12], %17 {strides = array<i32>} : memref<2x1xf32, #tpu.memory_space<vmem>>, vector<2x1xf32>,
    return
  }
}

</mosaic_0001>

<bundles_post_ra>
// kernel: head.1
= control target key start
LH: loop header
LB: loop body
LE: loop exit
PB: predicated region body
PF: predicated region fallthrough
CT: control target
= control target key end

     0   :  { %v30_v9 = vlaneseq  ;;  %vm235_vm0 = vcmask 1041409   ;;  %vm878_vm1 = vcmask 1041408   ;;  %vm887_vm2 = vcmask 1024   ;;  %s1531_s1 = inlined_call_operand.vmem [shape: bf16[768,256], index: 1, kind: input, shape index: {}]   ;;  %s1532_s0 = inlined_call_operand.vmem [shape: f32[2,8,768], index: 0, kind: input, shape index: {}]   ;;  %s1533_s2 = inlined_call_operand.vmem [shape: f32[1,256], index: 2, kind: input, shape index: {}]   ;;  %s1534_s3 = inlined_call_operand.vmem [shape: f32[1,256], index: 3, kind: input, shape index: {}]   ;;  %s1535_s4 = inlined_call_operand.<no memory space> [shape: f32[1], index: 4, kind: input, shape index: {}]   ;;  %s1536_s5 = inlined_call_operand.vmem [shape: f32[2,1], index: 5, kind: output, shape index: {}]  }
   0x1   :  { %v999_v0 = vld [vmem:[%s1531_s1 + $0x104] ss:$8 sps:$4 sm:$0xff]   ;;  %v1001_v1 = vld [vmem:[%s1531_s1 + $0x100] ss:$8 sps:$4 sm:$0xff]   ;;  %v1002_v2 = vld [vmem:[%s1531_s1 + $0x114] ss:$8 sps:$4 sm:$0xff]  }
   0x2   :  { %780 = vmatprep.subr.bf16.mxu0 %v999_v0  ;;  %v1004_v3 = vld [vmem:[%s1531_s1 + $0x110] ss:$8 sps:$4 sm:$0xff]   ;;  %v1005_v4 = vld [vmem:[%s1531_s1 + $0x124] ss:$8 sps:$4 sm:$0xff]   ;;  %v1007_v5 = vld [vmem:[%s1531_s1 + $0x120] ss:$8 sps:$4 sm:$0xff]  }
   0x3   :  { %781 = vmatpush1.bf16.msra.mxu0 %v1001_v1  ;;  %v1008_v6 = vld [vmem:[%s1531_s1 + $0x134] ss:$8 sps:$4 sm:$0xff]   ;;  %v1010_v7 = vld [vmem:[%s1531_s1 + $0x130] ss:$8 sps:$4 sm:$0xff]   ;;  %v1011_v8 = vld [vmem:[%s1531_s1 + $0x144] ss:$8 sps:$4 sm:$0xff]  }
   0x4   :  { %782 = vmatprep.subr.bf16.mxu0 %v1002_v2  ;;  %v1013_v10 = vld [vmem:[%s1531_s1 + $0x140] ss:$8 sps:$4 sm:$0xff]   ;;  %v1014_v11 = vld [vmem:[%s1531_s1 + $0x154] ss:$8 sps:$4 sm:$0xff]   ;;  %v1206_v12 = vshrl.u32 %v30_v9, 7 }
   0x5   :  { %v1016_v13 = vld [vmem:[%s1531_s1 + $0x150] ss:$8 sps:$4 sm:$0xff]   ;;  %v1017_v14 = vld [vmem:[%s1531_s1 + $0x164] ss:$8 sps:$4 sm:$0xff]   ;;  %v1046_v16 = vld [vmem:[%s1531_s1] ss:$8 sps:$4 sm:$0xff]  }
   0x6   :  { %v1044_v15 = vld [vmem:[%s1531_s1 + $0x4] ss:$8 sps:$4 sm:$0xff]   ;;  %v1019_v17 = vld [vmem:[%s1531_s1 + $0x160] ss:$8 sps:$4 sm:$0xff]   ;;  %v1020_v18 = vld [vmem:[%s1531_s1 + $0x174] ss:$8 sps:$4 sm:$0xff]  }
   0x7   :  { %783 = vmatpush1.bf16.msra.mxu0 %v1004_v3  ;;  %739 = vmatprep.subr.bf16.mxu1 %v1044_v15  ;;  %v44_v19 = vsub.s32 3, %v1206_v12  ;;  %v1050_v20 = vld [vmem:[%s1531_s1 + $0x14] ss:$8 sps:$4 sm:$0xff]   ;;  %v1052_v21 = vld [vmem:[%s1531_s1 + $0x10] ss:$8 sps:$4 sm:$0xff]   ;;  %v1234_v22 = vsub.s32 1, %v1206_v12 }
   0x8   :  { %784 = vmatprep.subr.bf16.mxu0 %v1005_v4  ;;  %740 = vmatpush1.bf16.msra.mxu1 %v1046_v16  ;;  %v21_v23 = vld [vmem:[%s1532_s0] ss:$8 sm:$0xf]  ;;  %v1023_v30 = vld [vmem:[%s1531_s1 + $0x184] ss:$8 sps:$4 sm:$0xff]   ;;  %v48_v43 = vsub.s32 4, %v1206_v12 }
   0x9   :  { %v22_v24 = vld [vmem:[%s1532_s0] ss:$8 sm:$0x30]  ;;  %741 = vmatprep.subr.bf16.mxu1 %v1050_v20  ;;  %v894_v27 = vld [vmem:[%s1532_s0 + $0x30] ss:$8 sm:$0x30] }
   0xa   :  { %v1242_v25 = vor.u32 %v22_v24, %v21_v23  ;;  %v893_v26 = vld [vmem:[%s1532_s0 + $0x30] ss:$8 sm:$0xf]  ;;  %v1056_v34 = vld [vmem:[%s1531_s1 + $0x24] ss:$8 sps:$4 sm:$0xff]   ;;  %v40_v1 = vsub.s32 2, %v1206_v12 }
   0xb   :  { %785 = vmatpush1.bf16.msra.mxu0 %v1007_v5  ;;  %v1022_v28 = vld [vmem:[%s1531_s1 + $0x170] ss:$8 sps:$4 sm:$0xff]   ;;  %v1253_v29 = vor.u32 %v894_v27, %v893_v26  ;;  %v1058_v35 = vld [vmem:[%s1531_s1 + $0x20] ss:$8 sps:$4 sm:$0xff]   ;;  %v1062_v41 = vld [vmem:[%s1531_s1 + $0x34] ss:$8 sps:$4 sm:$0xff]  }
   0xc   :  { %786 = vmatprep.subr.bf16.mxu0 %v1008_v6  ;;  %742 = vmatpush1.bf16.msra.mxu1 %v1052_v21  ;;  %v45_v31 = vrot.slane %v1242_v25, %v44_v19  ;;  %v37_v32 = vrot.slane %v1242_v25, %v1234_v22  ;;  %v1025_v37 = vld [vmem:[%s1531_s1 + $0x180] ss:$8 sps:$4 sm:$0xff]   ;;  %v1064_v44 = vld [vmem:[%s1531_s1 + $0x30] ss:$8 sps:$4 sm:$0xff]   ;;  %v1026_v45 = vld [vmem:[%s1531_s1 + $0x194] ss:$8 sps:$4 sm:$0xff]   ;;  %v49_v51 = vrot.slane %v1242_v25, %v48_v43 }
   0xd   :  { %v69_v33 = vrot.slane %v1253_v29, %v44_v19  ;;  %v61_v36 = vrot.slane %v1253_v29, %v1234_v22  ;;  %743 = vmatprep.subr.bf16.mxu1 %v1056_v34  ;;  %v1068_v49 = vld [vmem:[%s1531_s1 + $0x44] ss:$8 sps:$4 sm:$0xff]   ;;  %v73_v53 = vrot.slane %v1253_v29, %v48_v43  ;;  %v1028_v54 = vld [vmem:[%s1531_s1 + $0x190] ss:$8 sps:$4 sm:$0xff]   ;;  %v1070_v58 = vld [vmem:[%s1531_s1 + $0x40] ss:$8 sps:$4 sm:$0xff]   ;;  %v41_v19 = vrot.slane %v1242_v25, %v40_v1 }
   0xe   :  { %v93_v38 = vpack.c.bf16 %v45_v31, %v45_v31  ;;  %v91_v39 = vpack.c.bf16 %v37_v32, %v37_v32  ;;  %v1029_v56 = vld [vmem:[%s1531_s1 + $0x1a4] ss:$8 sps:$4 sm:$0xff]   ;;  %v1074_v60 = vld [vmem:[%s1531_s1 + $0x54] ss:$8 sps:$4 sm:$0xff]   ;;  %v94_v62 = vpack.c.bf16 %v49_v51, %v49_v51  ;;  %v1031_v0 = vld [vmem:[%s1531_s1 + $0x1a0] ss:$8 sps:$4 sm:$0xff]  }
   0xf   :  { %787 = vmatpush1.bf16.msra.mxu0 %v1010_v7  ;;  %v99_v40 = vpack.c.bf16 %v69_v33, %v69_v33  ;;  %v97_v42 = vpack.c.bf16 %v61_v36, %v61_v36  ;;  %v100_v2 = vpack.c.bf16 %v73_v53, %v73_v53  ;;  %v1032_v3 = vld [vmem:[%s1531_s1 + $0x1b4] ss:$8 sps:$4 sm:$0xff]   ;;  %v1076_v4 = vld [vmem:[%s1531_s1 + $0x50] ss:$8 sps:$4 sm:$0xff]   ;;  %v52_v5 = vsub.s32 5, %v1206_v12 }
  0x10   :  { %788 = vmatprep.subr.bf16.mxu0 %v1011_v8  ;;  %744 = vmatpush1.bf16.msra.mxu1 %v1058_v35  ;;  %v225_v46 = vunpack.c.l.b16 %v93_v38  ;;  %v223_v50 = vunpack.c.l.b16 %v91_v39  ;;  %v1080_v6 = vld [vmem:[%s1531_s1 + $0x64] ss:$8 sps:$4 sm:$0xff]   ;;  %v226_v7 = vunpack.c.l.b16 %v94_v62  ;;  %v1034_v9 = vld [vmem:[%s1531_s1 + $0x1b0] ss:$8 sps:$4 sm:$0xff]   ;;  %v1086_v16 = vld [vmem:[%s1531_s1 + $0x74] ss:$8 sps:$4 sm:$0xff]  }
  0x11   :  { %v231_v47 = vunpack.c.l.b16 %v99_v40  ;;  %745 = vmatprep.subr.bf16.mxu1 %v1062_v41  ;;  %v229_v48 = vunpack.c.l.b16 %v97_v42  ;;  %v232_v8 = vunpack.c.l.b16 %v100_v2  ;;  %v77_v15 = vrot.slane %v1253_v29, %v52_v5  ;;  %v1038_v21 = vld [vmem:[%s1531_s1 + $0x1d4] ss:$8 sps:$4 sm:$0xff]   ;;  %v1088_v23 = vld [vmem:[%s1531_s1 + $0x70] ss:$8 sps:$4 sm:$0xff]   ;;  %v1092_v27 = vld [vmem:[%s1531_s1 + $0x84] ss:$8 sps:$4 sm:$0xff]  }
  0x12   :  { %v53_v24 = vrot.slane %v1242_v25, %v52_v5  ;;  %v1041_v32 = vld [vmem:[%s1531_s1 + $0x1e4] ss:$8 sps:$4 sm:$0xff]   ;;  %v1094_v33 = vld [vmem:[%s1531_s1 + $0x80] ss:$8 sps:$4 sm:$0xff]   ;;  %v1098_v36 = vld [vmem:[%s1531_s1 + $0x94] ss:$8 sps:$4 sm:$0xff]  }
  0x13   :  { %789 = vmatpush1.bf16.msra.mxu0 %v1013_v10  ;;  %v241_v52 = vrot.slane %v231_v47, 7  ;;  %v237_v55 = vrot.slane %v229_v48, 7  ;;  %v65_v10 = vrot.slane %v1253_v29, %v40_v1  ;;  %v101_v26 = vpack.c.bf16 %v77_v15, %v77_v15  ;;  %v1047_v40 = vld [vmem:[%s1531_s1 + $0x1f4] ss:$8 sps:$4 sm:$0xff]   ;;  %v1100_v41 = vld [vmem:[%s1531_s1 + $0x90] ss:$8 sps:$4 sm:$0xff]  }
  0x14   :  { %790 = vmatprep.subr.bf16.mxu0 %v1014_v11  ;;  %746 = vmatpush1.bf16.msra.mxu1 %v1064_v44  ;;  %v243_v11 = vrot.slane %v232_v8, 7  ;;  %v95_v34 = vpack.c.bf16 %v53_v24, %v53_v24  ;;  %v1104_v44 = vld [vmem:[%s1531_s1 + $0xa4] ss:$8 sps:$4 sm:$0xff]   ;;  %v1106_v48 = vld [vmem:[%s1531_s1 + $0xa0] ss:$8 sps:$4 sm:$0xff]  }
  0x15   :  { %v242_v57 = vsel %vm235_vm0, %v241_v52, %v225_v46  ;;  %747 = vmatprep.subr.bf16.mxu1 %v1068_v49  ;;  %v238_v61 = vsel %vm235_vm0, %v237_v55, %v223_v50  ;;  %v98_v20 = vpack.c.bf16 %v65_v10, %v65_v10  ;;  %v233_v35 = vunpack.c.l.b16 %v101_v26  ;;  %v1055_v47 = vld [vmem:[%s1531_s1 + $0x204] ss:$8 sps:$4 sm:$0xff]   ;;  %v1110_v51 = vld [vmem:[%s1531_s1 + $0xb4] ss:$8 sps:$4 sm:$0xff]   ;;  %v1053_v53 = vld [vmem:[%s1531_s1 + $0x200] ss:$8 sps:$4 sm:$0xff]  }
  0x16   :  { %v250_v59 = vpack.c.b16 %v242_v57, %v242_v57  ;;  %v248_v63 = vpack.c.b16 %v238_v61, %v238_v61  ;;  %v227_v42 = vunpack.c.l.b16 %v95_v34  ;;  %v1382_v49 = vsub.s32 0, %v1206_v12  ;;  %v1061_v12 = vld [vmem:[%s1531_s1 + $0x214] ss:$8 sps:$4 sm:$0xff]   ;;  %v1112_v55 = vld [vmem:[%s1531_s1 + $0xb0] ss:$8 sps:$4 sm:$0xff]  }
  0x17   :  { %791 = vmatpush1.bf16.msra.mxu0 %v1016_v13  ;;  %v1035_v13 = vld [vmem:[%s1531_s1 + $0x1c4] ss:$8 sps:$4 sm:$0xff]   ;;  %v230_v31 = vunpack.c.l.b16 %v98_v20  ;;  %v245_v43 = vrot.slane %v233_v35, 7  ;;  %v1122_v62 = vld [vmem:[%s1531_s1 + $0xd4] ss:$8 sps:$4 sm:$0xff]  }
  0x18   :  { %792 = vmatprep.subr.bf16.mxu0 %v1017_v14  ;;  %812 = vmatprep.mubr.bf16.mxu0 %v250_v59  ;;  %v1082_v14 = vld [vmem:[%s1531_s1 + $0x60] ss:$8 sps:$4 sm:$0xff]   ;;  %v1116_v57 = vld [vmem:[%s1531_s1 + $0xc4] ss:$8 sps:$4 sm:$0xff]   ;;  %v1083_v15 = vld [vmem:[%s1531_s1 + $0x250] ss:$8 sps:$4 sm:$0xff]  }
  0x19   :  { %748 = vmatpush1.bf16.msra.mxu1 %v1070_v58  ;;  %771 = vmatprep.mubr.bf16.mxu1 %v248_v63  ;;  %v239_v39 = vrot.slane %v230_v31, 7  ;;  %v246_v50 = vsel %vm235_vm0, %v245_v43, %v227_v42  ;;  %v1059_v58 = vld [vmem:[%s1531_s1 + $0x210] ss:$8 sps:$4 sm:$0xff]   ;;  %v1067_v59 = vld [vmem:[%s1531_s1 + $0x224] ss:$8 sps:$4 sm:$0xff]  }
  0x1a   :  { %749 = vmatprep.subr.bf16.mxu1 %v1074_v60  ;;  %v33_v60 = vrot.slane %v1242_v25, %v1382_v49  ;;  %v1065_v63 = vld [vmem:[%s1531_s1 + $0x220] ss:$8 sps:$4 sm:$0xff]   ;;  %v1124_v25 = vld [vmem:[%s1531_s1 + $0xd0] ss:$8 sps:$4 sm:$0xff]   ;;  %v1079_v5 = vld [vmem:[%s1531_s1 + $0x244] ss:$8 sps:$4 sm:$0xff]  }
  0x1b   :  { %793 = vmatpush1.bf16.msra.mxu0 %v1019_v17  ;;  %v1331_v17 = vsel %vm235_vm0, %v243_v11, %v226_v7  ;;  %v1077_v10 = vld [vmem:[%s1531_s1 + $0x240] ss:$8 sps:$4 sm:$0xff]   ;;  %v1085_v11 = vld [vmem:[%s1531_s1 + $0x254] ss:$8 sps:$4 sm:$0xff]  }
  0x1c   :  { %794 = vmatprep.subr.bf16.mxu0 %v1020_v18  ;;  %v1037_v18 = vld [vmem:[%s1531_s1 + $0x1c0] ss:$8 sps:$4 sm:$0xff]   ;;  %v90_v1 = vpack.c.bf16 %v33_v60, %v33_v60  ;;  %v1097_v20 = vld [vmem:[%s1531_s1 + $0x274] ss:$8 sps:$4 sm:$0xff]  }
  0x1d   :  { %750 = vmatpush1.bf16.msra.mxu1 %v1076_v4  ;;  %v1071_v4 = vld [vmem:[%s1531_s1 + $0x230] ss:$8 sps:$4 sm:$0xff]   ;;  %v1101_v24 = vld [vmem:[%s1531_s1 + $0x280] ss:$8 sps:$4 sm:$0xff]   ;;  %v1109_v26 = vld [vmem:[%s1531_s1 + $0x294] ss:$8 sps:$4 sm:$0xff]  }
  0x1e   :  { %751 = vmatprep.subr.bf16.mxu1 %v1080_v6  ;;  %v1130_v6 = vld [vmem:[%s1531_s1 + $0xe0] ss:$8 sps:$4 sm:$0xff]   ;;  %v222_v7 = vunpack.c.l.b16 %v90_v1  ;;  %v1121_v31 = vld [vmem:[%s1531_s1 + $0x2b4] ss:$8 sps:$4 sm:$0xff]  }
  0x1f   :  { %795 = vmatpush1.bf16.msra.mxu0 %v1022_v28  ;;  %v1040_v28 = vld [vmem:[%s1531_s1 + $0x1d0] ss:$8 sps:$4 sm:$0xff]   ;;  %v1125_v34 = vld [vmem:[%s1531_s1 + $0x2c0] ss:$8 sps:$4 sm:$0xff]   ;;  %v1133_v35 = vld [vmem:[%s1531_s1 + $0x2d4] ss:$8 sps:$4 sm:$0xff]  }
  0x20   :  { %796 = vmatprep.subr.bf16.mxu0 %v1023_v30  ;;  %v92_v30 = vpack.c.bf16 %v41_v19, %v41_v19  ;;  %v1089_v19 = vld [vmem:[%s1531_s1 + $0x260] ss:$8 sps:$4 sm:$0xff]  }
  0x21   :  { %752 = vmatpush1.bf16.msra.mxu1 %v1082_v14 }
  0x22   :  { %753 = vmatprep.subr.bf16.mxu1 %v1086_v16  ;;  %v224_v38 = vunpack.c.l.b16 %v92_v30  ;;  %v1113_v30 = vld [vmem:[%s1531_s1 + $0x2a0] ss:$8 sps:$4 sm:$0xff]  }
  0x23   :  { %797 = vmatpush1.bf16.msra.mxu0 %v1025_v37  ;;  %v1043_v37 = vld [vmem:[%s1531_s1 + $0x1e0] ss:$8 sps:$4 sm:$0xff]  }
  0x24   :  { %798 = vmatprep.subr.bf16.mxu0 %v1026_v45  ;;  %v1049_v45 = vld [vmem:[%s1531_s1 + $0x1f0] ss:$8 sps:$4 sm:$0xff]   ;;  %v240_v46 = vsel %vm235_vm0, %v239_v39, %v224_v38  ;;  %v1137_v38 = vld [vmem:[%s1531_s1 + $0x2e0] ss:$8 sps:$4 sm:$0xff]   ;;  %v1142_v39 = vld [vmem:[%s1531_s1 + $0x2f4] ss:$8 sps:$4 sm:$0xff]  }
  0x25   :  { %754 = vmatpush1.bf16.msra.mxu1 %v1088_v23  ;;  %v249_v52 = vpack.c.b16 %v240_v46, %v240_v46  ;;  %v1103_v23 = vld [vmem:[%s1531_s1 + $0x284] ss:$8 sps:$4 sm:$0xff]   ;;  %v198_v46 = vld [vmem:[%s1533_s2] sm:$0x3] }
  0x26   :  { %755 = vmatprep.subr.bf16.mxu1 %v1092_v27  ;;  %v1107_v27 = vld [vmem:[%s1531_s1 + $0x290] ss:$8 sps:$4 sm:$0xff]  }
  0x27   :  { %799 = vmatpush1.bf16.msra.mxu0 %v1028_v54  ;;  %v252_v54 = vpack.c.b16 %v246_v50, %v246_v50 }
  0x28   :  { %800 = vmatprep.subr.bf16.mxu0 %v1029_v56  ;;  %v57_v56 = vrot.slane %v1253_v29, %v1382_v49  ;;  %v1118_v29 = vld [vmem:[%s1531_s1 + $0xc0] ss:$8 sps:$4 sm:$0xff]  }
  0x29   :  { %756 = vmatpush1.bf16.msra.mxu1 %v1094_v33  ;;  %v1127_v33 = vld [vmem:[%s1531_s1 + $0x2c4] ss:$8 sps:$4 sm:$0xff]  }
  0x2a   :  { %757 = vmatprep.subr.bf16.mxu1 %v1098_v36  ;;  %v96_v61 = vpack.c.bf16 %v57_v56, %v57_v56  ;;  %v1131_v36 = vld [vmem:[%s1531_s1 + $0x2d0] ss:$8 sps:$4 sm:$0xff]  }
  0x2b   :  { %801 = vmatpush1.bf16.msra.mxu0 %v1031_v0  ;;  %v1073_v0 = vld [vmem:[%s1531_s1 + $0x234] ss:$8 sps:$4 sm:$0xff]  }
  0x2c   :  { %802 = vmatprep.subr.bf16.mxu0 %v1032_v3  ;;  %v228_v2 = vunpack.c.l.b16 %v96_v61  ;;  %v1128_v3 = vld [vmem:[%s1531_s1 + $0xe4] ss:$8 sps:$4 sm:$0xff]  }
  0x2d   :  { %758 = vmatpush1.bf16.msra.mxu1 %v1100_v41  ;;  %v251_v41 = vpack.c.b16 %v1331_v17, %v1331_v17  ;;  %v864_v17 = vld [vmem:[%s1534_s3] sm:$0x3] }
  0x2e   :  { %759 = vmatprep.subr.bf16.mxu1 %v1104_v44  ;;  %v234_v8 = vrot.slane %v228_v2, 7 }
  0x2f   :  { %803 = vmatpush1.bf16.msra.mxu0 %v1034_v9  ;;  %v1134_v9 = vld [vmem:[%s1531_s1 + $0xf4] ss:$8 sps:$4 sm:$0xff]  }
  0x30   :  { %804 = vmatprep.subr.bf16.mxu0 %v1035_v13  ;;  %v1136_v13 = vld [vmem:[%s1531_s1 + $0xf0] ss:$8 sps:$4 sm:$0xff]   ;;  %v236_v14 = vsel %vm235_vm0, %v234_v8, %v222_v7 }
  0x31   :  { %760 = vmatpush1.bf16.msra.mxu1 %v1106_v48  ;;  %v247_v16 = vpack.c.b16 %v236_v14, %v236_v14  ;;  %v207_v48 = vrot.slane %v198_v46, %v1234_v22 }
  0x32   :  { %761 = vmatprep.subr.bf16.mxu1 %v1110_v51 }
  0x33   :  { %805 = vmatpush1.bf16.msra.mxu0 %v1037_v18  ;;  %v1091_v18 = vld [vmem:[%s1531_s1 + $0x264] ss:$8 sps:$4 sm:$0xff]  }
  0x34   :  { %806 = vmatprep.subr.bf16.mxu0 %v1038_v21  ;;  %v1095_v21 = vld [vmem:[%s1531_s1 + $0x270] ss:$8 sps:$4 sm:$0xff]  }
  0x35   :  { %762 = vmatpush1.bf16.msra.mxu1 %v1112_v55 }
  0x36   :  { %763 = vmatprep.subr.bf16.mxu1 %v1116_v57  ;;  %v873_v57 = vrot.slane %v864_v17, %v1234_v22 }
  0x37   :  { %807 = vmatpush1.bf16.msra.mxu0 %v1040_v28  ;;  %v1115_v28 = vld [vmem:[%s1531_s1 + $0x2a4] ss:$8 sps:$4 sm:$0xff]  }
  0x38   :  { %808 = vmatprep.subr.bf16.mxu0 %v1041_v32  ;;  %v1119_v32 = vld [vmem:[%s1531_s1 + $0x2b0] ss:$8 sps:$4 sm:$0xff]  }
  0x39   :  { %764 = vmatpush1.bf16.msra.mxu1 %v1118_v29 }
  0x3a   :  { %765 = vmatprep.subr.bf16.mxu1 %v1122_v62 }
  0x3b   :  { %809 = vmatpush1.bf16.msra.mxu0 %v1043_v37  ;;  %v1139_v37 = vld [vmem:[%s1531_s1 + $0x2e4] ss:$8 sps:$4 sm:$0xff]  }
  0x3c   :  { %810 = vmatprep.subr.bf16.mxu0 %v1047_v40  ;;  %v1140_v40 = vld [vmem:[%s1531_s1 + $0x2f0] ss:$8 sps:$4 sm:$0xff]  }
  0x3d   :  { %766 = vmatpush1.bf16.msra.mxu1 %v1124_v25  ;;  %v885_v25 = vstv %s1535_s4 }
  0x3e   :  { %767 = vmatprep.subr.bf16.mxu1 %v1128_v3 }
  0x3f   :  { %811 = vmatpush1.bf16.msra.mxu0 %v1049_v45 }
  0x40   :  { %821 = vmatprep.subr.bf16.mxu0 %v1055_v47  ;;  %v203_v47 = vrot.slane %v198_v46, %v1382_v49 }
  0x41   :  { %768 = vmatpush1.bf16.msra.mxu1 %v1130_v6 }
  0x42   :  { %813 = vmatmul.mubr.bf16.vlgmr.msra.gmra.mrb[0].mxu0 %v249_v52  ;;  %769 = vmatprep.subr.bf16.mxu1 %v1134_v9 }
  0x43   :  { %822 = vmatpush1.bf16.msra.mxu0 %v1053_v53  ;;  %853 = vmatprep.mubr.bf16.mxu0 %v252_v54 }
  0x44   :  { %823 = vmatprep.subr.bf16.mxu0 %v1061_v12  ;;  %v869_v12 = vrot.slane %v864_v17, %v1382_v49 }
  0x45   :  { %770 = vmatpush1.bf16.msra.mxu1 %v1136_v13 }
  0x47   :  { %824 = vmatpush1.bf16.msra.mxu0 %v1059_v58 }
  0x48   :  { %825 = vmatprep.subr.bf16.mxu0 %v1067_v59  ;;  %772 = vmatmul.mubr.bf16.vlgmr.msra.gmra.mrb[0].mxu1 %v247_v16 }
  0x4b   :  { %826 = vmatpush1.bf16.msra.mxu0 %v1065_v63 }
  0x4c   :  { %827 = vmatprep.subr.bf16.mxu0 %v1073_v0 }
  0x4f   :  { %828 = vmatpush1.bf16.msra.mxu0 %v1071_v4 }
  0x50   :  { %829 = vmatprep.subr.bf16.mxu0 %v1079_v5 }
  0x53   :  { %830 = vmatpush1.bf16.msra.mxu0 %v1077_v10 }
  0x54   :  { %831 = vmatprep.subr.bf16.mxu0 %v1085_v11 }
  0x57   :  { %832 = vmatpush1.bf16.msra.mxu0 %v1083_v15 }
  0x58   :  { %833 = vmatprep.subr.bf16.mxu0 %v1091_v18 }
  0x5b   :  { %834 = vmatpush1.bf16.msra.mxu0 %v1089_v19 }
  0x5c   :  { %835 = vmatprep.subr.bf16.mxu0 %v1097_v20 }
  0x5f   :  { %836 = vmatpush1.bf16.msra.mxu0 %v1095_v21 }
  0x60   :  { %837 = vmatprep.subr.bf16.mxu0 %v1103_v23 }
  0x63   :  { %838 = vmatpush1.bf16.msra.mxu0 %v1101_v24 }
  0x64   :  { %839 = vmatprep.subr.bf16.mxu0 %v1109_v26 }
  0x67   :  { %840 = vmatpush1.bf16.msra.mxu0 %v1107_v27 }
  0x68   :  { %841 = vmatprep.subr.bf16.mxu0 %v1115_v28 }
  0x6b   :  { %842 = vmatpush1.bf16.msra.mxu0 %v1113_v30 }
  0x6c   :  { %843 = vmatprep.subr.bf16.mxu0 %v1121_v31 }
  0x6f   :  { %844 = vmatpush1.bf16.msra.mxu0 %v1119_v32 }
  0x70   :  { %845 = vmatprep.subr.bf16.mxu0 %v1127_v33 }
  0x73   :  { %846 = vmatpush1.bf16.msra.mxu0 %v1125_v34 }
  0x74   :  { %847 = vmatprep.subr.bf16.mxu0 %v1133_v35 }
  0x77   :  { %848 = vmatpush1.bf16.msra.mxu0 %v1131_v36 }
  0x78   :  { %849 = vmatprep.subr.bf16.mxu0 %v1139_v37 }
  0x7b   :  { %850 = vmatpush1.bf16.msra.mxu0 %v1137_v38 }
  0x7c   :  { %851 = vmatprep.subr.bf16.mxu0 %v1142_v39 }
  0x7f   :  { %852 = vmatpush1.bf16.msra.mxu0 %v1140_v40 }
  0x82   :  { %854 = vmatmul.mubr.bf16.vlgmr.msra.gmra.mrb[0].mxu0 %v251_v41 }
 0x11b   :  { %v773_v42 = vpop.f32.mrb[0].mxu1 }
 0x11c   :  { %v775_v43 = vpop.f32.mrb[1].mxu1  ;;  %v774_v50 = vadd.f32 %v773_v42, %v203_v47 }
 0x11d   :  { %v777_v44 = vpop.f32.mrb[2].mxu1  ;;  %v776_v51 = vadd.f32 %v775_v43, %v207_v48 }
 0x11e   :  { %v778_v45 = vpop.f32.mrb[3].mxu1 }
 0x155   :  { %v855_v52 = vpop.f32.mrb[0].mxu0 }
 0x156   :  { %v992_v53 = vadd.f32 %v855_v52, %v774_v50  ;;  %v857_v54 = vpop.f32.mrb[1].mxu0 }
 0x157   :  { %v994_v55 = vadd.f32 %v857_v54, %v776_v51  ;;  %v859_v56 = vpop.f32.mrb[2].mxu0 }
 0x158   :  { %v862_v58 = vmax.f32 %v992_v53, 0.0  ;;  %v860_v59 = vpop.f32.mrb[3].mxu0 }
 0x159   :  { %v863_v29 = vmax.f32 %v994_v55, 0.0 }
 0x15a   :  { %v876_v60 = vmul.f32 %v869_v12, %v862_v58 }
 0x15b   :  { %v877_v61 = vmul.f32 %v873_v57, %v863_v29 }
 0x15c   :  { %v879_v62 = vsel %vm878_vm1, %v876_v60, 0.0 }
 0x15d   :  { %v880_v63 = vsel %vm878_vm1, %v877_v61, 0.0 }
 0x15e   :  { %v881_v0 = vadd.f32 %v880_v63, %v879_v62 }
 0x160   :  { %882 = vadd.xlane.f32.xlu0 %v881_v0 }
 0x1ed   :  { %v883_v1 = vpop.xlane.xlu0 %882 }
 0x1ee   :  { %v886_v49 = vadd.f32 %v885_v25, %v883_v1 }
 0x1f0   :  { %888 = vst.msk [vmem:[%s1536_s5] sm:$0x3] %vm887_vm2, %v886_v49 }

</bundles_post_ra>
